<compile_context>
chip_gen: v5e
topology: v5e:2x2
jax: 0.10.0
libtpu: 0.0.40
codegen_flags: <defaults>
</compile_context>

<pallas_src>
import functools

import jax
import jax.numpy as jnp
from jax.experimental import pallas as pl
from jax.experimental.pallas import tpu as pltpu


def _rpn_head_kernel(x_ref, w1_ref, b1_ref, wh_ref, bh_ref, out_ref):
    """One (batch, spatial-tile) block: fused 1x1x1-conv chain, channel-first.

    x_ref  : (Cin, Ts)  bf16/f32  input voxels (channels on sublanes)
    w1_ref : (64, Cin)            first conv weight
    b1_ref : (64, 1)    f32       first conv bias
    wh_ref : (7A, 64)             fused [logits; deltas] weight
    bh_ref : (7A, 1)    f32       fused [logits; deltas] bias
    out_ref: (7A, Ts)   f32       fused conv output (channel-first)
    """
    x = x_ref[...]
    # conv: Conv3d(Cin, 64, k=1) + ReLU   (f32 accumulation, f32 bias/ReLU)
    h = jnp.dot(w1_ref[...], x, preferred_element_type=jnp.float32)
    h = jnp.maximum(h + b1_ref[...], 0.0)
    # fused logits|deltas head: Conv3d(64, 7A, k=1)
    o = jnp.dot(wh_ref[...], h.astype(wh_ref.dtype),
                preferred_element_type=jnp.float32)
    out_ref[...] = (o + bh_ref[...]).astype(out_ref.dtype)


@functools.partial(jax.jit, static_argnames=("num_anchors", "tile_s", "use_bf16"))
def rpn_head_forward(f, params, num_anchors, tile_s=2048, use_bf16=True):
    """f: (N, Cin, D, H, W) float32 (PyTorch NCDHW convention).

    Returns (logits, deltas) with shapes
      logits: (N, D, H, W, A, 1)
      deltas: (N, D, H, W, A, 6)
    """
    w1, b1, wl, bl, wd, bd = (params[k] for k in
                              ("w1", "b1", "wl", "bl", "wd", "bd"))
    N, Cin, D, H, W = f.shape
    A = num_anchors
    hid = w1.shape[0]            # 64
    cout = 7 * A                 # A (logits) + 6A (deltas), fused
    S = D * H * W

    # --- fuse the two heads (one MXU pass instead of two) ------------------
    wh = jnp.concatenate([wl, wd], axis=0)            # (7A, 64), logits first
    bh = jnp.concatenate([bl, bd], axis=0)            # (7A,)

    cdt = jnp.bfloat16 if use_bf16 else f.dtype
    x3 = f.reshape(N, Cin, S).astype(cdt)             # free reshape, NO transpose
    w1c = w1.astype(cdt)
    whc = wh.astype(cdt)
    b1c = b1.reshape(hid, 1).astype(jnp.float32)
    bhc = bh.reshape(cout, 1).astype(jnp.float32)

    # --- spatial tiling (lane axis), shape-robust via padding --------------
    if S <= tile_s:
        ts, s_pad = S, S                               # full-extent block, any S
    else:
        assert tile_s % 128 == 0, "tile_s must be a multiple of 128"
        ts = tile_s
        s_pad = pl.cdiv(S, ts) * ts
        if s_pad != S:
            x3 = jnp.pad(x3, ((0, 0), (0, 0), (0, s_pad - S)))

    grid = (N, s_pad // ts)

    flops = 2 * N * S * (Cin * hid + hid * cout)
    bytes_accessed = (N * s_pad * (Cin * x3.dtype.itemsize + cout * f.dtype.itemsize)
                      + w1c.size * w1c.dtype.itemsize
                      + whc.size * whc.dtype.itemsize
                      + (hid + cout) * 4)

    out = pl.pallas_call(
        _rpn_head_kernel,
        out_shape=jax.ShapeDtypeStruct((N, cout, s_pad), f.dtype),
        grid_spec=pltpu.PrefetchScalarGridSpec(
            num_scalar_prefetch=0,
            grid=grid,
            in_specs=[
                pl.BlockSpec((pl.Squeezed(), Cin, ts), lambda n, s: (n, 0, s)),  # x
                pl.BlockSpec((hid, Cin), lambda n, s: (0, 0)),                   # W1
                pl.BlockSpec((hid, 1),   lambda n, s: (0, 0)),                   # b1
                pl.BlockSpec((cout, hid), lambda n, s: (0, 0)),                  # Wh
                pl.BlockSpec((cout, 1),   lambda n, s: (0, 0)),                  # bh
            ],
            out_specs=pl.BlockSpec((pl.Squeezed(), cout, ts),
                                   lambda n, s: (n, 0, s)),
        ),
        compiler_params=pltpu.CompilerParams(
            dimension_semantics=("parallel", "parallel")),
        cost_estimate=pl.CostEstimate(flops=flops, transcendentals=0,
                                      bytes_accessed=bytes_accessed),
    )(x3, w1c, b1c, whc, bhc)

    # --- glue: exactly the PyTorch view/transpose chain ---------------------
    # PyTorch: NCDHW head output -> channel-last, then 6A splits as (A, 6)
    # with A major (channel index c = a*6 + k).
    out = out[:, :, :S].reshape(N, cout, D, H, W)
    logits = jnp.transpose(out[:, :A], (0, 2, 3, 4, 1)).reshape(N, D, H, W, A, 1)
    deltas = jnp.transpose(out[:, A:], (0, 2, 3, 4, 1)).reshape(N, D, H, W, A, 6)
    return logits, deltas


def init_params(key, in_channels, num_anchors):
    """Deterministic synthetic parameters (shapes from RpnHead.__init__).

    PyTorch Conv3d(k=1) weight is (Cout, Cin, 1, 1, 1); stored here squeezed
    to (Cout, Cin), which is exactly the channel-first matmul orientation."""
    hid = 64
    A = num_anchors
    ks = jax.random.split(key, 6)
    scale = 0.05
    return {
        "w1": scale * jax.random.normal(ks[0], (hid, in_channels), jnp.float32),
        "b1": scale * jax.random.normal(ks[1], (hid,), jnp.float32),
        "wl": scale * jax.random.normal(ks[2], (1 * A, hid), jnp.float32),
        "bl": scale * jax.random.normal(ks[3], (1 * A,), jnp.float32),
        "wd": scale * jax.random.normal(ks[4], (6 * A, hid), jnp.float32),
        "bd": scale * jax.random.normal(ks[5], (6 * A,), jnp.float32),
    }


def _reference_forward(f, params, num_anchors):
    """Pure-JAX f32 reference mirroring the PyTorch forward (for verification)."""
    w1, b1, wl, bl, wd, bd = (params[k] for k in
                              ("w1", "b1", "wl", "bl", "wd", "bd"))
    N, Cin, D, H, W = f.shape
    A = num_anchors
    x = jnp.transpose(f, (0, 2, 3, 4, 1))                           # NDHWC
    h = jnp.maximum(jnp.einsum("ndhwc,oc->ndhwo", x, w1) + b1, 0.0)
    lg = jnp.einsum("ndhwo,ao->ndhwa", h, wl) + bl
    dl = jnp.einsum("ndhwo,ao->ndhwa", h, wd) + bd
    return lg.reshape(N, D, H, W, A, 1), dl.reshape(N, D, H, W, A, 6)


if __name__ == "__main__":
    config = {"anchors": [[3.0, 3.0, 3.0], [10.0, 10.0, 10.0], [30.0, 30.0, 30.0]]}
    num_anchors = len(config["anchors"])     # 3

    # Small shapes: batch=2, in_channels=32, D=H=W=8  (S = 512 voxels/batch)
    N, Cin, D, H, W = 2, 32, 8, 8, 8

    key = jax.random.PRNGKey(0)
    k_f, k_p = jax.random.split(key)
    f = jax.random.normal(k_f, (N, Cin, D, H, W), jnp.float32)
    params = init_params(k_p, Cin, num_anchors)

    logits, deltas = rpn_head_forward(f, params, num_anchors)
    jax.block_until_ready((logits, deltas))

    assert logits.shape == (N, D, H, W, num_anchors, 1)
    assert deltas.shape == (N, D, H, W, num_anchors, 6)

    ref_logits, ref_deltas = _reference_forward(f, params, num_anchors)
    # bf16 inputs / f32 accumulation -> compare against the f32 reference with
    # a bf16-appropriate tolerance.
    assert jnp.allclose(logits, ref_logits, atol=2e-2, rtol=2e-2)
    assert jnp.allclose(deltas, ref_deltas, atol=2e-2, rtol=2e-2)

    print("KERNEL_OK")
</pallas_src>

<mosaic_0001>
module attributes {stable_mosaic.version = 11 : i64} {
  func.func @_rpn_head_kernel(%arg0: i32, %arg1: i32, %arg2: memref<1x32x512xbf16, #tpu.memory_space<vmem>>, %arg3: memref<64x32xbf16, #tpu.memory_space<vmem>>, %arg4: memref<64x1xf32, #tpu.memory_space<vmem>>, %arg5: memref<21x64xbf16, #tpu.memory_space<vmem>>, %arg6: memref<21x1xf32, #tpu.memory_space<vmem>>, %arg7: memref<1x21x512xf32, #tpu.memory_space<vmem>>) attributes {dimension_semantics = [#tpu.dimension_semantics<parallel>, #tpu.dimension_semantics<parallel>], iteration_bounds = array<i64: 2, 1>, scalar_prefetch = 0 : i64, scratch_operands = 0 : i64, tpu.core_type = #tpu.core_type<tc>, window_params = [{transform_indices = @transform_0, window_bounds = array<i64: 1, 32, 512>}, {pipeline_mode = #tpu.pipeline_mode<synchronous>, transform_indices = @transform_1, window_bounds = array<i64: 64, 32>}, {pipeline_mode = #tpu.pipeline_mode<synchronous>, transform_indices = @transform_2, window_bounds = array<i64: 64, 1>}, {pipeline_mode = #tpu.pipeline_mode<synchronous>, transform_indices = @transform_3, window_bounds = array<i64: 21, 64>}, {pipeline_mode = #tpu.pipeline_mode<synchronous>, transform_indices = @transform_4, window_bounds = array<i64: 21, 1>}, {transform_indices = @transform_5, window_bounds = array<i64: 1, 21, 512>}]} {
    %c0 = arith.constant 0 : index
    %c0_0 = arith.constant 0 : index
    %c0_1 = arith.constant 0 : index
    %0 = vector.load %arg2[%c0, %c0_0, %c0_1] : memref<1x32x512xbf16, #tpu.memory_space<vmem>>, vector<1x32x512xbf16>
    %1 = vector.shape_cast %0 : vector<1x32x512xbf16> to vector<32x512xbf16>
    %c0_2 = arith.constant 0 : index
    %c0_3 = arith.constant 0 : index
    %2 = vector.load %arg3[%c0_2, %c0_3] : memref<64x32xbf16, #tpu.memory_space<vmem>>, vector<64x32xbf16>
    %cst = arith.constant dense<0.000000e+00> : vector<64x512xf32>
    %3 = tpu.matmul %2, %1, %cst {dimension_numbers = #tpu.dot_dimension_numbers<[1], [0], [0], [1], [0, 0, 1, 1], [], []>} : vector<64x32xbf16>, vector<32x512xbf16>, vector<64x512xf32> -> vector<64x512xf32>
    %c0_4 = arith.constant 0 : index
    %c0_5 = arith.constant 0 : index
    %4 = vector.load %arg4[%c0_4, %c0_5] : memref<64x1xf32, #tpu.memory_space<vmem>>, vector<64x1xf32>
    %5 = vector.broadcast %4 : vector<64x1xf32> to vector<64x512xf32>
    %6 = arith.addf %3, %5 : vector<64x512xf32>
    %cst_6 = arith.constant 0.000000e+00 : f32
    %7 = vector.broadcast %cst_6 : f32 to vector<64x512xf32>
    %8 = arith.maximumf %6, %7 : vector<64x512xf32>
    %c0_7 = arith.constant 0 : index
    %c0_8 = arith.constant 0 : index
    %9 = vector.load %arg5[%c0_7, %c0_8] : memref<21x64xbf16, #tpu.memory_space<vmem>>, vector<21x64xbf16>
    %10 = arith.truncf %8 : vector<64x512xf32> to vector<64x512xbf16>
    %cst_9 = arith.constant dense<0.000000e+00> : vector<21x512xf32>
    %11 = tpu.matmul %9, %10, %cst_9 {dimension_numbers = #tpu.dot_dimension_numbers<[1], [0], [0], [1], [0, 0, 1, 1], [], []>} : vector<21x64xbf16>, vector<64x512xbf16>, vector<21x512xf32> -> vector<21x512xf32>
    %c0_10 = arith.constant 0 : index
    %c0_11 = arith.constant 0 : index
    %12 = vector.load %arg6[%c0_10, %c0_11] : memref<21x1xf32, #tpu.memory_space<vmem>>, vector<21x1xf32>
    %13 = vector.broadcast %12 : vector<21x1xf32> to vector<21x512xf32>
    %14 = arith.addf %11, %13 : vector<21x512xf32>
    %c0_12 = arith.constant 0 : index
    %c0_13 = arith.constant 0 : index
    %c0_14 = arith.constant 0 : index
    %15 = vector.load %arg7[%c0_12, %c0_13, %c0_14] : memref<1x21x512xf32, #tpu.memory_space<vmem>>, vector<1x21x512xf32>
    %16 = vector.shape_cast %15 : vector<1x21x512xf32> to vector<21x512xf32>
    %17 = vector.shape_cast %14 : vector<21x512xf32> to vector<1x21x512xf32>
    tpu.vector_store %arg7[%c0_12, %c0_13, %c0_14], %17 {strides = array<i32>} : memref<1x21x512xf32, #tpu.memory_space<vmem>>, vector<1x21x512xf32>,
    return
  }
  func.func @transform_0(%arg0: i32, %arg1: i32) -> (i32, i32, i32) {
    %c0_i32 = arith.constant 0 : i32
    %c0_i32_0 = arith.constant 0 : i32
    return %arg0, %c0_i32, %arg1 : i32, i32, i32
  }
  func.func @transform_1(%arg0: i32, %arg1: i32) -> (i32, i32) {
    %c0_i32 = arith.constant 0 : i32
    %c0_i32_0 = arith.constant 0 : i32
    %c0_i32_1 = arith.constant 0 : i32
    return %c0_i32, %c0_i32_0 : i32, i32
  }
  func.func @transform_2(%arg0: i32, %arg1: i32) -> (i32, i32) {
    %c0_i32 = arith.constant 0 : i32
    %c0_i32_0 = arith.constant 0 : i32
    %c0_i32_1 = arith.constant 0 : i32
    return %c0_i32, %c0_i32_0 : i32, i32
  }
  func.func @transform_3(%arg0: i32, %arg1: i32) -> (i32, i32) {
    %c0_i32 = arith.constant 0 : i32
    %c0_i32_0 = arith.constant 0 : i32
    %c0_i32_1 = arith.constant 0 : i32
    return %c0_i32, %c0_i32_0 : i32, i32
  }
  func.func @transform_4(%arg0: i32, %arg1: i32) -> (i32, i32) {
    %c0_i32 = arith.constant 0 : i32
    %c0_i32_0 = arith.constant 0 : i32
    %c0_i32_1 = arith.constant 0 : i32
    return %c0_i32, %c0_i32_0 : i32, i32
  }
  func.func @transform_5(%arg0: i32, %arg1: i32) -> (i32, i32, i32) {
    %c0_i32 = arith.constant 0 : i32
    %c0_i32_0 = arith.constant 0 : i32
    return %arg0, %c0_i32, %arg1 : i32, i32, i32
  }
}

</mosaic_0001>

<bundles_post_ra>
// kernel: rpn_head_forward.1
= control target key start
LH: loop header
LB: loop body
LE: loop exit
PB: predicated region body
PF: predicated region fallthrough
CT: control target
= control target key end

     0   :  { %s957_s18 = smov 0   ;;  %s959_s19 = smov 0   ;;  %s1142_s0 = inlined_call_operand.vmem [shape: bf16[2,32,512], index: 0, kind: input, shape index: {}]   ;;  %s1143_s1 = inlined_call_operand.vmem [shape: bf16[64,32], index: 1, kind: input, shape index: {}]   ;;  %s1144_s2 = inlined_call_operand.vmem [shape: f32[64,1], index: 2, kind: input, shape index: {}]   ;;  %s1145_s3 = inlined_call_operand.vmem [shape: bf16[21,64], index: 3, kind: input, shape index: {}]   ;;  %s1146_s4 = inlined_call_operand.vmem [shape: f32[21,1], index: 4, kind: input, shape index: {}]   ;;  %s1147_s5 = inlined_call_operand.vmem [shape: f32[2,21,512], index: 5, kind: output, shape index: {}]  }
   0x1   :  { %s961_s20 = smov 0  }
   0x2 LB: > { %s27_s21 = sadd.s32 1, %s920_s19  ;;  %p777_p0 = scmp.ge.s32.totalorder %s924_s20, 1  ;;  %s924_s20 = sphi %s961_s20, %s15_s20   ;;  %s920_s19 = sphi %s959_s19, %s1149_s19   ;;  %s916_s18 = sphi %s957_s18, %s1148_s18  }
   0x3   : > { %p29_p1 = scmp.ge.s32.totalorder %s27_s21, 2  ;;  %p208_p2 = scmp.lt.s32.totalorder %s924_s20, 3 }
   0x5   : > { %s1151_s21 = smov (%p29_p1, %s27_s21), 0  ;;  %p209_p3 = pnand %p777_p0, %p208_p2 }
   0x6   : > { %p245_p4 = scmp.lt.s32.totalorder (!%p209_p3), %s916_s18, 1 }
   0x7   : > { %212 = sbr.rel (%p209_p3) target bundleno = 393 (0x189), region = 40 }
   0xc   : > { %v287_v0 = vld [vmem:[%s1144_s2 + $0x30] sm:$0xff]  ;;  %v285_v1 = vld [vmem:[%s1144_s2 + $0x20] sm:$0xff]  ;;  %v926_v2 = vmov 0   ;;  %s1153_s18 = smov (!%p245_p4, %s916_s18), 1  ;;  %v288_v6 = vld [vmem:[%s1144_s2 + $0x38] sm:$0xff]  ;;  %vm389_vm0 = vcmask 261120  }
   0xd   : > { %899 = vset.pattern.permute.xlu0 %v926_v2  ;;  %900 = vset.pattern.permute.xlu1 %v926_v2  ;;  %s859_s26 = sshll.u32 %s1153_s18, 6  ;;  %v286_v11 = vld [vmem:[%s1144_s2 + $0x28] sm:$0xff]  ;;  %v868_v29 = vld [vmem:[%s1143_s1] sm:$0xff]  ;;  %v283_v33 = vld [vmem:[%s1144_s2 + $0x10] sm:$0xff]  ;;  %vm595_vm1 = vcmask 523264   ;;  %s873_s14 = smul.u32 96, %s1153_s18 }
   0xe   : > { %321 = vperm.xlu0 %899, %v287_v0   ;;  %311 = vperm.xlu1 %900, %v285_v1   ;;  %s252_s29 = scalar_lea.vmem %s1142_s0, %s859_s26  ;;  %v281_v30 = vld [vmem:[%s1144_s2] sm:$0xff]  ;;  %v282_v31 = vld [vmem:[%s1144_s2 + $0x8] sm:$0xff]  ;;  %v571_v35 = vld [vmem:[%s1146_s4 + $0x10] sm:$0x1f] }
   0xf   : > { %901 = vset.pattern.permute.xlu2 %v926_v2  ;;  %v815_v3 = vld [vmem:[%s252_s29 + $0x20] sm:$0xf]  ;;  %v866_v4 = vld [vmem:[%s252_s29 + $0x2c] sm:$0xf0]  ;;  %v864_v5 = vld [vmem:[%s252_s29 + $0x24] sm:$0xf]  ;;  %s1119_s17 = scalar_lea.vmem %s1147_s5, %s873_s14 }
  0x10   : > { %v816_v7 = vor.u32 %v866_v4, %v815_v3  ;;  %v817_v8 = vld [vmem:[%s252_s29 + $0x30] sm:$0xf0]  ;;  %v823_v9 = vld [vmem:[%s252_s29 + $0x28] sm:$0xf]  ;;  %v867_v10 = vld [vmem:[%s252_s29 + $0x34] sm:$0xf0]  ;;  %301 = vperm.xlu2 %901, %v283_v33  }
  0x11   : > { %v820_v12 = vor.u32 %v864_v5, %v817_v8  ;;  %v824_v13 = vor.u32 %v867_v10, %v823_v9  ;;  %v865_v14 = vld [vmem:[%s252_s29 + $0x2c] sm:$0xf]  ;;  %v825_v15 = vld [vmem:[%s252_s29 + $0x38] sm:$0xf0]  ;;  %v799_v16 = vld [vmem:[%s252_s29] sm:$0xf] }
  0x12   : > { %408 = vmatpush.bf16.msra.mxu0 %v816_v7  ;;  %v828_v17 = vor.u32 %v865_v14, %v825_v15  ;;  %v862_v18 = vld [vmem:[%s252_s29 + $0xc] sm:$0xf0]  ;;  %v860_v19 = vld [vmem:[%s252_s29 + $0x4] sm:$0xf]  ;;  %v801_v20 = vld [vmem:[%s252_s29 + $0x10] sm:$0xf0] }
  0x13   : > { %437 = vmatpush.bf16.msra.mxu1 %v820_v12  ;;  %466 = vmatpush.bf16.msra.mxu2 %v824_v13  ;;  %v800_v21 = vor.u32 %v862_v18, %v799_v16  ;;  %v804_v22 = vor.u32 %v860_v19, %v801_v20  ;;  %v807_v23 = vld [vmem:[%s252_s29 + $0x8] sm:$0xf]  ;;  %v863_v24 = vld [vmem:[%s252_s29 + $0x14] sm:$0xf0]  ;;  %v861_v25 = vld [vmem:[%s252_s29 + $0xc] sm:$0xf] }
  0x14   : > { %495 = vmatpush.bf16.msra.mxu3 %v828_v17  ;;  %v808_v26 = vor.u32 %v863_v24, %v807_v23  ;;  %v809_v27 = vld [vmem:[%s252_s29 + $0x18] sm:$0xf0]  ;;  %v869_v32 = vld [vmem:[%s1143_s1 + $0x8] sm:$0xff]  ;;  %v870_v37 = vld [vmem:[%s1143_s1 + $0x10] sm:$0xff] }
  0x15   : > { %v812_v28 = vor.u32 %v861_v25, %v809_v27  ;;  %v570_v34 = vld [vmem:[%s1146_s4 + $0x8] sm:$0xff]  ;;  %v284_v36 = vld [vmem:[%s1144_s2 + $0x18] sm:$0xff]  ;;  %v569_v39 = vld [vmem:[%s1146_s4] sm:$0xff] }
  0x16   : > { %326 = vperm.xlu0 %899, %v288_v6   ;;  %316 = vperm.xlu1 %900, %v286_v11   ;;  %v871_v38 = vld [vmem:[%s1143_s1 + $0x18] sm:$0xff] }
  0x17   : > { %409 = vmatpush.bf16.msra.mxu0 %v800_v21  ;;  %438 = vmatpush.bf16.msra.mxu1 %v804_v22 }
  0x18   : > { %467 = vmatpush.bf16.msra.mxu2 %v808_v26  ;;  %496 = vmatpush.bf16.msra.mxu3 %v812_v28 }
  0x19   : > { %306 = vperm.xlu2 %901, %v284_v36  }
  0x1a   : > { %829 = vmatmul.msk.bf16.vlgmr.msra.gmra.mxu0 %vm389_vm0, %v868_v29  ;;  %833 = vmatmul.msk.bf16.vlgmr.msra.gmra.mxu1 %vm389_vm0, %v868_v29 }
  0x1b   : > { %837 = vmatmul.msk.bf16.vlgmr.msra.gmra.mxu2 %vm389_vm0, %v868_v29  ;;  %841 = vmatmul.msk.bf16.vlgmr.msra.gmra.mxu3 %vm389_vm0, %v868_v29 }
  0x1e   : > { %291 = vperm.xlu0 %899, %v281_v30   ;;  %296 = vperm.xlu1 %900, %v282_v31  }
  0x21   : > { %574 = vperm.xlu2 %901, %v569_v39  }
  0x26   : > { %579 = vperm.xlu0 %899, %v570_v34   ;;  %584 = vperm.xlu1 %900, %v571_v35  }
  0x2a   : > { %830 = vmatmul.msk.bf16.gmra.mxu0 %vm389_vm0, %v869_v32  ;;  %834 = vmatmul.msk.bf16.gmra.mxu1 %vm389_vm0, %v869_v32 }
  0x2b   : > { %838 = vmatmul.msk.bf16.gmra.mxu2 %vm389_vm0, %v869_v32  ;;  %842 = vmatmul.msk.bf16.gmra.mxu3 %vm389_vm0, %v869_v32 }
  0x3a   : > { %831 = vmatmul.msk.bf16.gmra.mxu0 %vm389_vm0, %v870_v37  ;;  %835 = vmatmul.msk.bf16.gmra.mxu1 %vm389_vm0, %v870_v37 }
  0x3b   : > { %839 = vmatmul.msk.bf16.gmra.mxu2 %vm389_vm0, %v870_v37  ;;  %843 = vmatmul.msk.bf16.gmra.mxu3 %vm389_vm0, %v870_v37 }
  0x4a   : > { %832 = vmatmul.msk.bf16.gmra.mxu0 %vm389_vm0, %v871_v38  ;;  %836 = vmatmul.msk.bf16.gmra.mxu1 %vm389_vm0, %v871_v38 }
  0x4b   : > { %840 = vmatmul.msk.bf16.gmra.mxu2 %vm389_vm0, %v871_v38  ;;  %844 = vmatmul.msk.bf16.gmra.mxu3 %vm389_vm0, %v871_v38 }
  0x6a   : > { %v1066_v1 = vpop.permute.xlu2 %301 }
  0x73   : > { %v307_v14 = vpop.permute.xlu2 %306 }
  0x80   : > { %v322_v58 = vpop.permute.xlu0 %321  ;;  %v1062_v59 = vpop.permute.xlu1 %311 }
  0x88   : > { %v327_v0 = vpop.permute.xlu0 %326  ;;  %v317_v6 = vpop.permute.xlu1 %316 }
  0x90   : > { %v1068_v7 = vpop.permute.xlu0 %291  ;;  %v297_v27 = vpop.permute.xlu1 %296 }
  0x97   : > { %v411_v40 = vpop.f32.mrf.mxu0  ;;  %v440_v41 = vpop.f32.mrf.mxu1 }
  0x98   : > { %v1071_v10 = vadd.f32 %v411_v40, %v1068_v7  ;;  %v1076_v22 = vadd.f32 %v440_v41, %v1068_v7 }
  0x9a   : > { %v518_v26 = vmax.f32 %v1071_v10, 0.0 }
  0x9e   : > { %v1042_v42 = vpop.f32.mrf.mxu2  ;;  %v1044_v43 = vpop.f32.mrf.mxu3 }
  0x9f   : > { %v1046_v44 = vpop.f32.mrf.mxu0  ;;  %v1048_v45 = vpop.f32.mrf.mxu1 }
  0xa6   : > { %v1050_v46 = vpop.f32.mrf.mxu2  ;;  %v1052_v47 = vpop.f32.mrf.mxu3 }
  0xa7   : > { %v416_v48 = vpop.f32.mrf.mxu0  ;;  %v445_v49 = vpop.f32.mrf.mxu1 }
  0xa8   : > { %v417_v25 = vadd.f32 %v416_v48, %v1066_v1  ;;  %v446_v31 = vadd.f32 %v445_v49, %v1066_v1 }
  0xaa   : > { %v526_v48 = vmax.f32 %v417_v25, 0.0 }
  0xae   : > { %v1054_v50 = vpop.f32.mrf.mxu2  ;;  %v1056_v51 = vpop.f32.mrf.mxu3 }
  0xaf   : > { %v418_v52 = vpop.f32.mrf.mxu0  ;;  %v447_v53 = vpop.f32.mrf.mxu1 }
  0xb0   : > { %v419_v30 = vadd.f32 %v418_v52, %v307_v14  ;;  %v448_v35 = vadd.f32 %v447_v53, %v307_v14 }
  0xb2   : > { %v530_v49 = vmax.f32 %v419_v30, 0.0 }
  0xb6   : > { %v1058_v54 = vpop.f32.mrf.mxu2  ;;  %v1060_v55 = vpop.f32.mrf.mxu3 }
  0xb7   : > { %v421_v56 = vpop.f32.mrf.mxu0  ;;  %v450_v57 = vpop.f32.mrf.mxu1 }
  0xb8   : > { %v422_v15 = vadd.f32 %v421_v56, %v1062_v59  ;;  %v451_v19 = vadd.f32 %v450_v57, %v1062_v59  ;;  %v414_v56 = vadd.f32 %v1046_v44, %v297_v27  ;;  %v443_v57 = vadd.f32 %v1048_v45, %v297_v27 }
  0xba   : > { %v534_v32 = vmax.f32 %v422_v15, 0.0  ;;  %v535_v36 = vmax.f32 %v451_v19, 0.0  ;;  %v557_v19 = vpack.c.bf16 %v530_v49, %v526_v48 }
  0xbe   : > { %v479_v60 = vpop.f32.mrf.mxu2  ;;  %v1064_v61 = vpop.f32.mrf.mxu3 }
  0xbf   : > { %v423_v62 = vpop.f32.mrf.mxu0  ;;  %v452_v63 = vpop.f32.mrf.mxu1  ;;  %v509_v44 = vadd.f32 %v1064_v61, %v1062_v59 }
  0xc0   : > { %v424_v16 = vadd.f32 %v423_v62, %v317_v6  ;;  %v453_v20 = vadd.f32 %v452_v63, %v317_v6 }
  0xc2   : > { %v538_v33 = vmax.f32 %v424_v16, 0.0  ;;  %v539_v37 = vmax.f32 %v453_v20, 0.0  ;;  %v477_v16 = vadd.f32 %v1058_v54, %v307_v14  ;;  %v475_v20 = vadd.f32 %v1054_v50, %v1066_v1 }
  0xc3   : > { %v537_v54 = vmax.f32 %v509_v44, 0.0 }
  0xc4   : > { %v528_v30 = vmax.f32 %v475_v20, 0.0 }
  0xc6   : > { %v481_v2 = vpop.f32.mrf.mxu2  ;;  %v510_v3 = vpop.f32.mrf.mxu3 }
  0xc7   : > { %v426_v4 = vpop.f32.mrf.mxu0  ;;  %v455_v5 = vpop.f32.mrf.mxu1  ;;  %v482_v62 = vadd.f32 %v481_v2, %v317_v6  ;;  %v519_v2 = vmax.f32 %v1076_v22, 0.0  ;;  %v504_v22 = vadd.f32 %v1056_v51, %v1066_v1  ;;  %v499_v1 = vadd.f32 %v1044_v43, %v1068_v7 }
  0xc8   : > { %v427_v8 = vadd.f32 %v426_v4, %v322_v58  ;;  %v456_v11 = vadd.f32 %v455_v5, %v322_v58  ;;  %v527_v4 = vmax.f32 %v446_v31, 0.0  ;;  %v511_v5 = vadd.f32 %v510_v3, %v317_v6 }
  0xc9   : > { %v522_v3 = vmax.f32 %v414_v56, 0.0  ;;  %v506_v6 = vadd.f32 %v1060_v55, %v307_v14  ;;  %v501_v14 = vadd.f32 %v1052_v47, %v297_v27  ;;  %v529_v31 = vmax.f32 %v504_v22, 0.0 }
  0xca   : > { %v542_v23 = vmax.f32 %v427_v8, 0.0  ;;  %v543_v28 = vmax.f32 %v456_v11, 0.0  ;;  %v561_v8 = vpack.c.bf16 %v538_v33, %v534_v32  ;;  %v531_v11 = vmax.f32 %v448_v35, 0.0 }
  0xcb   : > { %v533_v25 = vmax.f32 %v506_v6, 0.0  ;;  %v553_v50 = vpack.c.bf16 %v522_v3, %v518_v26  ;;  %v525_v26 = vmax.f32 %v501_v14, 0.0  ;;  %v521_v32 = vmax.f32 %v499_v1, 0.0 }
  0xcc   : > { %v558_v61 = vpack.c.bf16 %v531_v11, %v527_v4 }
  0xcd   : > { %v556_v43 = vpack.c.bf16 %v525_v26, %v521_v32 }
  0xce   : > { %v484_v9 = vpop.f32.mrf.mxu2  ;;  %v513_v12 = vpop.f32.mrf.mxu3 }
  0xcf   : > { %v428_v13 = vpop.f32.mrf.mxu0  ;;  %v457_v18 = vpop.f32.mrf.mxu1  ;;  %v485_v38 = vadd.f32 %v484_v9, %v322_v58  ;;  %v514_v40 = vadd.f32 %v513_v12, %v322_v58  ;;  %v480_v9 = vadd.f32 %v479_v60, %v1062_v59  ;;  %v541_v60 = vmax.f32 %v511_v5, 0.0 }
  0xd0   : > { %v429_v17 = vadd.f32 %v428_v13, %v327_v0  ;;  %v458_v21 = vadd.f32 %v457_v18, %v327_v0  ;;  %v562_v13 = vpack.c.bf16 %v539_v37, %v535_v36  ;;  %v575_v36 = vpop.permute.xlu2 %574  ;;  %v585_v5 = vpop.permute.xlu1 %584 }
  0xd1   : > { %v544_v58 = vmax.f32 %v485_v38, 0.0  ;;  %v545_v15 = vmax.f32 %v514_v40, 0.0  ;;  %v536_v59 = vmax.f32 %v480_v9, 0.0 }
  0xd2   : > { %v546_v24 = vmax.f32 %v429_v17, 0.0  ;;  %v547_v29 = vmax.f32 %v458_v21, 0.0  ;;  %v540_v17 = vmax.f32 %v482_v62, 0.0  ;;  %v523_v21 = vmax.f32 %v443_v57, 0.0 }
  0xd4   : > { %v565_v34 = vpack.c.bf16 %v546_v24, %v542_v23  ;;  %v566_v39 = vpack.c.bf16 %v547_v29, %v543_v28  ;;  %v472_v23 = vadd.f32 %v1050_v46, %v297_v27  ;;  %v532_v24 = vmax.f32 %v477_v16, 0.0  ;;  %v872_v46 = vld [vmem:[%s1145_s3] sm:$0xff] }
  0xd5   : > { %v563_v55 = vpack.c.bf16 %v540_v17, %v536_v59  ;;  %v564_v28 = vpack.c.bf16 %v541_v60, %v537_v54  ;;  %v470_v29 = vadd.f32 %v1042_v42, %v1068_v7  ;;  %v554_v51 = vpack.c.bf16 %v523_v21, %v519_v2  ;;  %v552_v7 = vld [vmem:[%s1145_s3 + $0x8] sm:$0x7] }
  0xd6   : > { %v486_v41 = vpop.f32.mrf.mxu2  ;;  %606 = vmatpush.bf16.msrb.mxu0 %v565_v34  ;;  %v515_v63 = vpop.f32.mrf.mxu3  ;;  %624 = vmatpush.bf16.msrb.mxu1 %v566_v39  ;;  %v524_v47 = vmax.f32 %v472_v23, 0.0  ;;  %v559_v10 = vpack.c.bf16 %v532_v24, %v528_v30  ;;  %v560_v27 = vpack.c.bf16 %v533_v25, %v529_v31  ;;  %v592_v34 = vunpack.c.l.b16 %v552_v7 }
  0xd7   : > { %v487_v52 = vadd.f32 %v486_v41, %v327_v0  ;;  %v516_v53 = vadd.f32 %v515_v63, %v327_v0  ;;  %v520_v42 = vmax.f32 %v470_v29, 0.0  ;;  %v580_v41 = vpop.permute.xlu0 %579 }
  0xd8   : > { %v594_v35 = vpack.c.b16 %v592_v34, %v592_v34 }
  0xd9   : > { %v548_v12 = vmax.f32 %v487_v52, 0.0  ;;  %v549_v45 = vmax.f32 %v516_v53, 0.0  ;;  %v555_v33 = vpack.c.bf16 %v524_v47, %v520_v42 }
  0xda   : > { %607 = vmatpush.bf16.msrb.mxu0 %v561_v8  ;;  %625 = vmatpush.bf16.msrb.mxu1 %v562_v13 }
  0xdb   : > { %v567_v0 = vpack.c.bf16 %v548_v12, %v544_v58  ;;  %v568_v18 = vpack.c.bf16 %v549_v45, %v545_v15 }
  0xdd   : > { %642 = vmatpush.bf16.msrb.mxu2 %v567_v0  ;;  %660 = vmatpush.bf16.msrb.mxu3 %v568_v18 }
  0xde   : > { %608 = vmatpush.bf16.msrb.mxu0 %v557_v19  ;;  %626 = vmatpush.bf16.msrb.mxu1 %v558_v61 }
  0xe1   : > { %643 = vmatpush.bf16.msrb.mxu2 %v563_v55  ;;  %661 = vmatpush.bf16.msrb.mxu3 %v564_v28 }
  0xe2   : > { %609 = vmatpush.bf16.msrb.mxu0 %v553_v50  ;;  %627 = vmatpush.bf16.msrb.mxu1 %v554_v51 }
  0xe5   : > { %644 = vmatpush.bf16.msrb.mxu2 %v559_v10  ;;  %849 = vmatmul.msk.bf16.vlgmr.msrb.gmra.mxu0 %vm595_vm1, %v872_v46 }
  0xe6   : > { %662 = vmatpush.bf16.msrb.mxu3 %v560_v27  ;;  %851 = vmatmul.msk.bf16.vlgmr.msrb.gmra.mxu1 %vm595_vm1, %v872_v46 }
  0xe9   : > { %645 = vmatpush.bf16.msrb.mxu2 %v555_v33 }
  0xea   : > { %663 = vmatpush.bf16.msrb.mxu3 %v556_v43 }
  0xec   : > { %853 = vmatmul.msk.bf16.vlgmr.msrb.gmra.mxu2 %vm595_vm1, %v872_v46 }
  0xed   : > { %855 = vmatmul.msk.bf16.vlgmr.msrb.gmra.mxu3 %vm595_vm1, %v872_v46 }
  0xf5   : > { %850 = vmatmul.msk.bf16.gmra.mxu0 %vm595_vm1, %v594_v35 }
  0xf6   : > { %852 = vmatmul.msk.bf16.gmra.mxu1 %vm595_vm1, %v594_v35 }
  0xfc   : > { %854 = vmatmul.msk.bf16.gmra.mxu2 %vm595_vm1, %v594_v35 }
  0xfd   : > { %856 = vmatmul.msk.bf16.gmra.mxu3 %vm595_vm1, %v594_v35 }
 0x162   : > { %v611_v37 = vpop.f32.mrf.mxu0 }
 0x163   : > { %v612_v38 = vadd.f32 %v611_v37, %v575_v36  ;;  %v629_v39 = vpop.f32.mrf.mxu1 }
 0x164   : > { %v630_v40 = vadd.f32 %v629_v39, %v575_v36 }
 0x165   : > { %674 = vst [vmem:[%s1119_s17] sm:$0xff] %v612_v38 }
 0x166   : > { %675 = vst [vmem:[%s1119_s17 + $0x8] sm:$0xff] %v630_v40 }
 0x16a   : > { %v613_v48 = vpop.f32.mrf.mxu0 }
 0x16b   : > { %v614_v56 = vadd.f32 %v613_v48, %v580_v41  ;;  %v631_v57 = vpop.f32.mrf.mxu1 }
 0x16c   : > { %v632_v62 = vadd.f32 %v631_v57, %v580_v41 }
 0x16d   : > { %678 = vst [vmem:[%s1119_s17 + $0x20] sm:$0xff] %v614_v56 }
 0x16e   : > { %679 = vst [vmem:[%s1119_s17 + $0x28] sm:$0xff] %v632_v62 }
 0x16f   : > { %v647_v52 = vpop.f32.mrf.mxu2 }
 0x170   : > { %v648_v63 = vadd.f32 %v647_v52, %v575_v36  ;;  %v665_v49 = vpop.f32.mrf.mxu3 }
 0x171   : > { %v666_v4 = vadd.f32 %v665_v49, %v575_v36 }
 0x172   : > { %676 = vst [vmem:[%s1119_s17 + $0x10] sm:$0xff] %v648_v63  ;;  %v616_v53 = vpop.f32.mrf.mxu0 }
 0x173   : > { %677 = vst [vmem:[%s1119_s17 + $0x18] sm:$0xff] %v666_v4  ;;  %v617_v8 = vadd.f32 %v616_v53, %v585_v5  ;;  %v634_v11 = vpop.f32.mrf.mxu1 }
 0x174   : > { %v635_v9 = vadd.f32 %v634_v11, %v585_v5 }
 0x175   : > { %682 = vst [vmem:[%s1119_s17 + $0x40] sm:$0x1f] %v617_v8 }
 0x176   : > { %683 = vst [vmem:[%s1119_s17 + $0x48] sm:$0x1f] %v635_v9 }
 0x177   : > { %v649_v58 = vpop.f32.mrf.mxu2 }
 0x178   : > { %v650_v12 = vadd.f32 %v649_v58, %v580_v41  ;;  %v667_v13 = vpop.f32.mrf.mxu3 }
 0x179   : > { %v668_v44 = vadd.f32 %v667_v13, %v580_v41 }
 0x17a   : > { %680 = vst [vmem:[%s1119_s17 + $0x30] sm:$0xff] %v650_v12  ;;  %v618_v15 = vpop.f32.mrf.mxu0 }
 0x17b   : > { %681 = vst [vmem:[%s1119_s17 + $0x38] sm:$0xff] %v668_v44  ;;  %v636_v45 = vpop.f32.mrf.mxu1 }
 0x17f   : > { %v652_v2 = vpop.f32.mrf.mxu2 }
 0x180   : > { %v653_v16 = vadd.f32 %v652_v2, %v585_v5  ;;  %v670_v17 = vpop.f32.mrf.mxu3 }
 0x181   : > { %v671_v0 = vadd.f32 %v670_v17, %v585_v5 }
 0x182   : > { %684 = vst [vmem:[%s1119_s17 + $0x50] sm:$0x1f] %v653_v16 }
 0x183   : > { %685 = vst [vmem:[%s1119_s17 + $0x58] sm:$0x1f] %v671_v0 }
 0x187   : > { %v654_v3 = vpop.f32.mrf.mxu2 }
 0x188   : > { %v672_v6 = vpop.f32.mrf.mxu3 }
 0x189 PF: > { %s15_s20 = sadd.s32 1, %s924_s20   ;;  %s1148_s18 = smov %s920_s19 }
 0x18a   : > { %p12_p5 = scmp.ge.s32.totalorder %s15_s20, 4   ;;  %s1149_s19 = smov %s1151_s21 }
 0x18c   :  { %14 = sbr.rel (!%p12_p5) target bundleno = 2 (0x2), region = 70 }

</bundles_post_ra>
